<compile_context>
chip_gen: v5e
topology: v5e:2x2
jax: 0.10.0
libtpu: 0.0.40
codegen_flags: <defaults>
</compile_context>

<pallas_src>
import jax
import jax.numpy as jnp
from jax.experimental import pallas as pl
from jax.experimental.pallas import tpu as pltpu


def _round_up(x: int, m: int) -> int:
    return ((x + m - 1) // m) * m


def _pad2(a, rows: int, cols: int):
    pr, pc = rows - a.shape[0], cols - a.shape[1]
    if pr == 0 and pc == 0:
        return a
    return jnp.pad(a, ((0, pr), (0, pc)))


def glu_kernel(x_ref, ctx_ref, w1_ref, b1_ref, w2_ref, b2_ref, o_ref):
    # gate = sigmoid(context @ W1 + b1); MXU matmul accumulates in f32.
    gate = jnp.dot(ctx_ref[...], w1_ref[...],
                   preferred_element_type=jnp.float32)
    gate = jax.nn.sigmoid(gate + b1_ref[...].astype(jnp.float32))
    # h = gate * x.  Cast back to the input dtype so bf16 inputs feed the
    # native low-precision MXU datapath on the second (dominant) matmul.
    h = (gate * x_ref[...].astype(jnp.float32)).astype(x_ref.dtype)
    out = jnp.dot(h, w2_ref[...], preferred_element_type=jnp.float32)
    o_ref[...] = (out + b2_ref[...].astype(jnp.float32)).astype(o_ref.dtype)


def glu_forward(x, context, w1_t, b1, w2_t, b2, *, block_b=None, lane=128):
    """x: [B, input_dim], context: [B, context_dim] -> [B, output_dim].

    Weights are stored pre-transposed: w1_t [context_dim, input_dim],
    w2_t [input_dim, output_dim]; biases are [1, out].
    """
    B, input_dim = x.shape
    _, context_dim = context.shape
    output_dim = w2_t.shape[1]
    dtype = x.dtype
    itemsize = jnp.dtype(dtype).itemsize

    # --- lane-dense feature padding (avoids masked vst.msk partial stores) ---
    in_p = _round_up(input_dim, lane)
    ctx_p = _round_up(context_dim, lane)
    out_p = _round_up(output_dim, lane)

    # --- pick a batch tile -------------------------------------------------
    if block_b is None:
        target = 1024 if dtype == jnp.bfloat16 else 512
        block_b = min(target, _round_up(B, 8))
    block_b = max(8, _round_up(block_b, 8))

    # Shrink block_b until the estimated working set fits a budget that is
    # safe on every generation (v7x has only 64 MiB physical VMEM).
    VMEM_BUDGET = 48 * 1024 * 1024

    def vmem_bytes(bb: int) -> int:
        act = 2 * bb * (in_p + ctx_p + out_p) * itemsize          # 2x-buffered tiles
        wts = 2 * (ctx_p * in_p + in_p * out_p + in_p + out_p) * itemsize
        return act + wts

    while block_b > 8 and vmem_bytes(block_b) > VMEM_BUDGET:
        block_b = max(8, _round_up(block_b // 2, 8))

    B_p = _round_up(B, block_b)
    grid = (B_p // block_b,)

    # --- pad operands (zero pad is exact for this op) ----------------------
    xp = _pad2(x, B_p, in_p)
    ctxp = _pad2(context, B_p, ctx_p)
    w1p = _pad2(w1_t, ctx_p, in_p)
    b1p = _pad2(b1, 1, in_p)
    w2p = _pad2(w2_t, in_p, out_p)
    b2p = _pad2(b2, 1, out_p)

    vmem_limit = int(min(100 * 1024 * 1024,
                         max(vmem_bytes(block_b) + (2 << 20), 16 << 20)))

    cost = pl.CostEstimate(
        flops=2 * B_p * (ctx_p * in_p + in_p * out_p),
        transcendentals=B_p * in_p,  # sigmoid
        bytes_accessed=(B_p * (in_p + ctx_p + out_p)
                        + ctx_p * in_p + in_p * out_p + in_p + out_p) * itemsize,
    )

    out_padded = pl.pallas_call(
        glu_kernel,
        out_shape=jax.ShapeDtypeStruct((B_p, out_p), dtype),
        grid_spec=pltpu.PrefetchScalarGridSpec(
            num_scalar_prefetch=0,
            grid=grid,
            in_specs=[
                pl.BlockSpec((block_b, in_p), lambda i: (i, 0)),   # x
                pl.BlockSpec((block_b, ctx_p), lambda i: (i, 0)),  # context
                pl.BlockSpec((ctx_p, in_p), lambda i: (0, 0)),     # W1^T (resident)
                pl.BlockSpec((1, in_p), lambda i: (0, 0)),         # b1
                pl.BlockSpec((in_p, out_p), lambda i: (0, 0)),     # W2^T (resident)
                pl.BlockSpec((1, out_p), lambda i: (0, 0)),        # b2
            ],
            out_specs=pl.BlockSpec((block_b, out_p), lambda i: (i, 0)),
        ),
        compiler_params=pltpu.CompilerParams(
            dimension_semantics=("parallel",),
            vmem_limit_bytes=vmem_limit,
        ),
        cost_estimate=cost,
    )(xp, ctxp, w1p, b1p, w2p, b2p)

    return out_padded[:B, :output_dim]


def init_glu_params(key, input_dim, output_dim, context_dim, dtype=jnp.float32):
    """Deterministic init mimicking nn.Linear default U[-1/sqrt(fan_in), +...]."""
    k1, k2, k3, k4 = jax.random.split(key, 4)
    bound1 = 1.0 / (context_dim ** 0.5)
    bound2 = 1.0 / (input_dim ** 0.5)
    # Stored pre-transposed: [in, out]
    w1_t = jax.random.uniform(k1, (context_dim, input_dim), dtype,
                              minval=-bound1, maxval=bound1)
    b1 = jax.random.uniform(k2, (1, input_dim), dtype,
                            minval=-bound1, maxval=bound1)
    w2_t = jax.random.uniform(k3, (input_dim, output_dim), dtype,
                              minval=-bound2, maxval=bound2)
    b2 = jax.random.uniform(k4, (1, output_dim), dtype,
                            minval=-bound2, maxval=bound2)
    return w1_t, b1, w2_t, b2


if __name__ == "__main__":
    B, input_dim, output_dim, context_dim = 8, 32, 24, 16

    key = jax.random.PRNGKey(0)
    kx, kc, kp = jax.random.split(key, 3)
    x = jax.random.normal(kx, (B, input_dim), jnp.float32)
    context = jax.random.normal(kc, (B, context_dim), jnp.float32)
    w1_t, b1, w2_t, b2 = init_glu_params(kp, input_dim, output_dim, context_dim)

    out = glu_forward(x, context, w1_t, b1, w2_t, b2)
    out = jax.block_until_ready(out)

    # Pure-JAX reference check.
    gate = jax.nn.sigmoid(context @ w1_t + b1)
    ref = (gate * x) @ w2_t + b2
    assert out.shape == (B, output_dim)
    assert jnp.allclose(out, ref, atol=1e-5, rtol=1e-5)

    print("KERNEL_OK")
</pallas_src>

<mosaic_0001>
module attributes {stable_mosaic.version = 11 : i64} {
  func.func @glu_kernel(%arg0: i32, %arg1: memref<8x128xf32, #tpu.memory_space<vmem>>, %arg2: memref<8x128xf32, #tpu.memory_space<vmem>>, %arg3: memref<128x128xf32, #tpu.memory_space<vmem>>, %arg4: memref<1x128xf32, #tpu.memory_space<vmem>>, %arg5: memref<128x128xf32, #tpu.memory_space<vmem>>, %arg6: memref<1x128xf32, #tpu.memory_space<vmem>>, %arg7: memref<8x128xf32, #tpu.memory_space<vmem>>) attributes {dimension_semantics = [#tpu.dimension_semantics<parallel>], iteration_bounds = array<i64: 1>, scalar_prefetch = 0 : i64, scratch_operands = 0 : i64, tpu.core_type = #tpu.core_type<tc>, window_params = [{transform_indices = @transform_0, window_bounds = array<i64: 8, 128>}, {transform_indices = @transform_1, window_bounds = array<i64: 8, 128>}, {pipeline_mode = #tpu.pipeline_mode<synchronous>, transform_indices = @transform_2, window_bounds = array<i64: 128, 128>}, {pipeline_mode = #tpu.pipeline_mode<synchronous>, transform_indices = @transform_3, window_bounds = array<i64: 1, 128>}, {pipeline_mode = #tpu.pipeline_mode<synchronous>, transform_indices = @transform_4, window_bounds = array<i64: 128, 128>}, {pipeline_mode = #tpu.pipeline_mode<synchronous>, transform_indices = @transform_5, window_bounds = array<i64: 1, 128>}, {transform_indices = @transform_6, window_bounds = array<i64: 8, 128>}]} {
    %c0 = arith.constant 0 : index
    %c0_0 = arith.constant 0 : index
    %0 = vector.load %arg2[%c0, %c0_0] : memref<8x128xf32, #tpu.memory_space<vmem>>, vector<8x128xf32>
    %c0_1 = arith.constant 0 : index
    %c0_2 = arith.constant 0 : index
    %1 = vector.load %arg3[%c0_1, %c0_2] : memref<128x128xf32, #tpu.memory_space<vmem>>, vector<128x128xf32>
    %cst = arith.constant dense<0.000000e+00> : vector<8x128xf32>
    %2 = tpu.matmul %0, %1, %cst {dimension_numbers = #tpu.dot_dimension_numbers<[1], [0], [0], [1], [0, 0, 1, 1], [], []>} : vector<8x128xf32>, vector<128x128xf32>, vector<8x128xf32> -> vector<8x128xf32>
    %c0_3 = arith.constant 0 : index
    %c0_4 = arith.constant 0 : index
    %3 = vector.load %arg4[%c0_3, %c0_4] : memref<1x128xf32, #tpu.memory_space<vmem>>, vector<1x128xf32>
    %4 = vector.broadcast %3 : vector<1x128xf32> to vector<8x128xf32>
    %5 = arith.addf %2, %4 : vector<8x128xf32>
    %6 = arith.negf %5 : vector<8x128xf32>
    %7 = math.exp %6 : vector<8x128xf32>
    %cst_5 = arith.constant 1.000000e+00 : f32
    %8 = vector.broadcast %cst_5 : f32 to vector<8x128xf32>
    %9 = arith.addf %8, %7 : vector<8x128xf32>
    %10 = arith.divf %8, %9 : vector<8x128xf32>
    %c0_6 = arith.constant 0 : index
    %c0_7 = arith.constant 0 : index
    %11 = vector.load %arg1[%c0_6, %c0_7] : memref<8x128xf32, #tpu.memory_space<vmem>>, vector<8x128xf32>
    %12 = arith.mulf %10, %11 : vector<8x128xf32>
    %c0_8 = arith.constant 0 : index
    %c0_9 = arith.constant 0 : index
    %13 = vector.load %arg5[%c0_8, %c0_9] : memref<128x128xf32, #tpu.memory_space<vmem>>, vector<128x128xf32>
    %cst_10 = arith.constant dense<0.000000e+00> : vector<8x128xf32>
    %14 = tpu.matmul %12, %13, %cst_10 {dimension_numbers = #tpu.dot_dimension_numbers<[1], [0], [0], [1], [0, 0, 1, 1], [], []>} : vector<8x128xf32>, vector<128x128xf32>, vector<8x128xf32> -> vector<8x128xf32>
    %c0_11 = arith.constant 0 : index
    %c0_12 = arith.constant 0 : index
    %15 = vector.load %arg6[%c0_11, %c0_12] : memref<1x128xf32, #tpu.memory_space<vmem>>, vector<1x128xf32>
    %16 = vector.broadcast %15 : vector<1x128xf32> to vector<8x128xf32>
    %17 = arith.addf %14, %16 : vector<8x128xf32>
    %c0_13 = arith.constant 0 : index
    %c0_14 = arith.constant 0 : index
    %18 = vector.load %arg7[%c0_13, %c0_14] : memref<8x128xf32, #tpu.memory_space<vmem>>, vector<8x128xf32>
    tpu.vector_store %arg7[%c0_13, %c0_14], %17 {strides = array<i32>} : memref<8x128xf32, #tpu.memory_space<vmem>>, vector<8x128xf32>,
    return
  }
  func.func @transform_0(%arg0: i32) -> (i32, i32) {
    %c0_i32 = arith.constant 0 : i32
    %c0_i32_0 = arith.constant 0 : i32
    return %arg0, %c0_i32 : i32, i32
  }
  func.func @transform_1(%arg0: i32) -> (i32, i32) {
    %c0_i32 = arith.constant 0 : i32
    %c0_i32_0 = arith.constant 0 : i32
    return %arg0, %c0_i32 : i32, i32
  }
  func.func @transform_2(%arg0: i32) -> (i32, i32) {
    %c0_i32 = arith.constant 0 : i32
    %c0_i32_0 = arith.constant 0 : i32
    %c0_i32_1 = arith.constant 0 : i32
    return %c0_i32, %c0_i32_0 : i32, i32
  }
  func.func @transform_3(%arg0: i32) -> (i32, i32) {
    %c0_i32 = arith.constant 0 : i32
    %c0_i32_0 = arith.constant 0 : i32
    %c0_i32_1 = arith.constant 0 : i32
    return %c0_i32, %c0_i32_0 : i32, i32
  }
  func.func @transform_4(%arg0: i32) -> (i32, i32) {
    %c0_i32 = arith.constant 0 : i32
    %c0_i32_0 = arith.constant 0 : i32
    %c0_i32_1 = arith.constant 0 : i32
    return %c0_i32, %c0_i32_0 : i32, i32
  }
  func.func @transform_5(%arg0: i32) -> (i32, i32) {
    %c0_i32 = arith.constant 0 : i32
    %c0_i32_0 = arith.constant 0 : i32
    %c0_i32_1 = arith.constant 0 : i32
    return %c0_i32, %c0_i32_0 : i32, i32
  }
  func.func @transform_6(%arg0: i32) -> (i32, i32) {
    %c0_i32 = arith.constant 0 : i32
    %c0_i32_0 = arith.constant 0 : i32
    return %arg0, %c0_i32 : i32, i32
  }
}

</mosaic_0001>

<bundles_post_ra>
// kernel: tpu_custom_call.1
= control target key start
LH: loop header
LB: loop body
LE: loop exit
PB: predicated region body
PF: predicated region fallthrough
CT: control target
= control target key end

     0   :  { %11 = vsyncpa [#allocation3], 0  ;;  %s410_s0 = inlined_call_operand.hbm [shape: f32[8,128], index: 0, kind: input, shape index: {}]   ;;  %s411_s1 = inlined_call_operand.hbm [shape: f32[8,128], index: 1, kind: input, shape index: {}]   ;;  %s412_s2 = inlined_call_operand.hbm [shape: f32[128,128], index: 2, kind: input, shape index: {}]   ;;  %s413_s3 = inlined_call_operand.vmem [shape: f32[1,128], index: 3, kind: input, shape index: {}]   ;;  %s414_s4 = inlined_call_operand.hbm [shape: f32[128,128], index: 4, kind: input, shape index: {}]   ;;  %s415_s5 = inlined_call_operand.vmem [shape: f32[1,128], index: 5, kind: input, shape index: {}]   ;;  %s416_s6 = inlined_call_operand.hbm [shape: f32[8,128], index: 6, kind: output, shape index: {}]  }
   0x1   :  { %12 = vsyncpa [#allocation6], 0 }
   0x2   :  { %13 = vsyncpa [#allocation9], 0  ;;  %s31_s23 = sshll.u32 %s411_s1, 4  ;;  %s32_s23 = int_to_ptr.hbm [resolvable:$true] %s31_s23 }
   0x3   :  { %14 = vsyncpa [#allocation4], 0  ;;  %s347_s24 = smov [#allocation5]   ;;  %s20_s28 = sshll.u32 %s410_s0, 4  ;;  %s21_s28 = int_to_ptr.hbm [resolvable:$true] %s20_s28 }
   0x4   :  { %s33_s25 = sshll.u32 %s347_s24, 4  ;;  %s348_s29 = smov [#allocation2]   ;;  %s34_s25 = int_to_ptr.vmem [resolvable:$true] %s33_s25 }
   0x5   :  { %36 = dma.hbm_to_vmem [thread:$0]  %s32_s23, 128, %s34_s25, [#allocation6]  }
   0x6   :  { %s22_s30 = sshll.u32 %s348_s29, 4  ;;  %s41_s9 = sshll.u32 %s412_s2, 4  ;;  %s23_s30 = int_to_ptr.vmem [resolvable:$true] %s22_s30  ;;  %s42_s9 = int_to_ptr.hbm [resolvable:$true] %s41_s9 }
   0x7   :  { %25 = dma.hbm_to_vmem [thread:$0]  %s21_s28, 128, %s23_s30, [#allocation3]  }
   0x8   :  { %s349_s1 = smov [#allocation7]   ;;  %s56_s13 = sshll.u32 %s414_s4, 4  ;;  %s57_s13 = int_to_ptr.hbm [resolvable:$true] %s56_s13 }
   0x9   :  { %s43_s10 = sshll.u32 %s349_s1, 4  ;;  %s350_s14 = smov 128   ;;  %s44_s10 = int_to_ptr.vmem [resolvable:$true] %s43_s10 }
   0xa   :  { %s351_s0 = smov 8   ;;  %s352_s15 = smov [#allocation8]  }
   0xb   :  { %49 = dma.hbm_to_vmem [thread:$0]  %s42_s9, 2048, %s44_s10, [#allocation6], %s350_s14, %s350_s14, %s351_s0  }
   0xc   :  { %s58_s16 = sshll.u32 %s352_s15, 4  ;;  %s59_s16 = int_to_ptr.vmem [resolvable:$true] %s58_s16 }
   0xd   :  { %64 = dma.hbm_to_vmem [thread:$0]  %s57_s13, 2048, %s59_s16, [#allocation9], %s350_s14, %s350_s14, %s351_s0  }
   0xe   :  { %339 = dma.done.wait [#allocation3], 128  }
   0xf   :  { %340 = vsyncadd [#allocation3], 4294967168 }
  0x10   :  { %341 = dma.done.wait [#allocation6], 2176  }
  0x11   :  { %342 = vsyncadd [#allocation6], 4294965120 }
  0x12   :  { %343 = dma.done.wait [#allocation9], 2048  }
  0x13   :  { %344 = vsyncadd [#allocation9], 4294965248  ;;  %v99_v0 = vld [vmem:[#allocation7 + $0x78] sm:$0xff]  ;;  %v98_v1 = vld [vmem:[#allocation7 + $0x70] sm:$0xff]  ;;  %s353_s18 = smov [#allocation10]   ;;  %s193_s22 = sshll.u32 %s416_s6, 4  ;;  %s194_s22 = int_to_ptr.hbm [resolvable:$true] %s193_s22 }
  0x14   :  { %104 = vmatpush.msra.mxu0 %v99_v0  ;;  %v97_v2 = vld [vmem:[#allocation7 + $0x68] sm:$0xff]  ;;  %v96_v3 = vld [vmem:[#allocation7 + $0x60] sm:$0xff]  ;;  %v95_v4 = vld [vmem:[#allocation7 + $0x58] sm:$0xff]  ;;  %s191_s19 = sshll.u32 %s353_s18, 4  ;;  %s192_s19 = int_to_ptr.vmem [resolvable:$true] %s191_s19 }
  0x15   :  { %v94_v5 = vld [vmem:[#allocation7 + $0x50] sm:$0xff]  ;;  %v93_v6 = vld [vmem:[#allocation7 + $0x48] sm:$0xff]  ;;  %v92_v7 = vld [vmem:[#allocation7 + $0x40] sm:$0xff] }
  0x16   :  { %105 = vmatpush.msra.mxu0 %v98_v1  ;;  %v91_v8 = vld [vmem:[#allocation7 + $0x38] sm:$0xff]  ;;  %v90_v9 = vld [vmem:[#allocation7 + $0x30] sm:$0xff]  ;;  %v89_v10 = vld [vmem:[#allocation7 + $0x28] sm:$0xff] }
  0x17   :  { %v88_v11 = vld [vmem:[#allocation7 + $0x20] sm:$0xff]  ;;  %v87_v12 = vld [vmem:[#allocation7 + $0x18] sm:$0xff]  ;;  %v86_v13 = vld [vmem:[#allocation7 + $0x10] sm:$0xff] }
  0x18   :  { %106 = vmatpush.msra.mxu0 %v97_v2  ;;  %v85_v14 = vld [vmem:[#allocation7 + $0x8] sm:$0xff]  ;;  %v84_v15 = vld [vmem:[#allocation7] sm:$0xff]  ;;  %v83_v16 = vld [vmem:[#allocation5] sm:$0xff] }
  0x19   :  { %v160_v17 = vld [vmem:[#allocation8 + $0x78] sm:$0xff]  ;;  %v159_v18 = vld [vmem:[#allocation8 + $0x70] sm:$0xff]  ;;  %v158_v19 = vld [vmem:[#allocation8 + $0x68] sm:$0xff] }
  0x1a   :  { %107 = vmatpush.msra.mxu0 %v96_v3  ;;  %165 = vmatpush.msra.mxu1 %v160_v17  ;;  %v157_v20 = vld [vmem:[#allocation8 + $0x60] sm:$0xff]  ;;  %v156_v21 = vld [vmem:[#allocation8 + $0x58] sm:$0xff]  ;;  %v155_v22 = vld [vmem:[#allocation8 + $0x50] sm:$0xff] }
  0x1b   :  { %v154_v23 = vld [vmem:[#allocation8 + $0x48] sm:$0xff]  ;;  %v153_v24 = vld [vmem:[#allocation8 + $0x40] sm:$0xff]  ;;  %v152_v25 = vld [vmem:[#allocation8 + $0x38] sm:$0xff] }
  0x1c   :  { %108 = vmatpush.msra.mxu0 %v95_v4  ;;  %166 = vmatpush.msra.mxu1 %v159_v18  ;;  %v151_v26 = vld [vmem:[#allocation8 + $0x30] sm:$0xff]  ;;  %v150_v27 = vld [vmem:[#allocation8 + $0x28] sm:$0xff]  ;;  %v149_v28 = vld [vmem:[#allocation8 + $0x20] sm:$0xff] }
  0x1d   :  { %v148_v29 = vld [vmem:[#allocation8 + $0x18] sm:$0xff]  ;;  %v147_v30 = vld [vmem:[#allocation8 + $0x10] sm:$0xff]  ;;  %v146_v31 = vld [vmem:[#allocation8 + $0x8] sm:$0xff] }
  0x1e   :  { %109 = vmatpush.msra.mxu0 %v94_v5  ;;  %167 = vmatpush.msra.mxu1 %v158_v19  ;;  %v213_v32 = vld [vmem:[%s413_s3] ss:$0 sm:$0xff]  ;;  %v145_v33 = vld [vmem:[#allocation8] sm:$0xff] }
  0x1f   :  { %v143_v47 = vld [vmem:[#allocation2] sm:$0xff] }
  0x20   :  { %110 = vmatpush.msra.mxu0 %v93_v6  ;;  %168 = vmatpush.msra.mxu1 %v157_v20  ;;  %v214_v51 = vld [vmem:[%s415_s5] ss:$0 sm:$0xff] }
  0x22   :  { %111 = vmatpush.msra.mxu0 %v92_v7  ;;  %169 = vmatpush.msra.mxu1 %v156_v21 }
  0x24   :  { %112 = vmatpush.msra.mxu0 %v91_v8  ;;  %170 = vmatpush.msra.mxu1 %v155_v22 }
  0x26   :  { %113 = vmatpush.msra.mxu0 %v90_v9  ;;  %171 = vmatpush.msra.mxu1 %v154_v23 }
  0x28   :  { %114 = vmatpush.msra.mxu0 %v89_v10  ;;  %172 = vmatpush.msra.mxu1 %v153_v24 }
  0x2a   :  { %115 = vmatpush.msra.mxu0 %v88_v11  ;;  %173 = vmatpush.msra.mxu1 %v152_v25 }
  0x2c   :  { %116 = vmatpush.msra.mxu0 %v87_v12  ;;  %174 = vmatpush.msra.mxu1 %v151_v26 }
  0x2e   :  { %117 = vmatpush.msra.mxu0 %v86_v13  ;;  %175 = vmatpush.msra.mxu1 %v150_v27 }
  0x30   :  { %118 = vmatpush.msra.mxu0 %v85_v14  ;;  %176 = vmatpush.msra.mxu1 %v149_v28 }
  0x32   :  { %119 = vmatpush.msra.mxu0 %v84_v15  ;;  %177 = vmatpush.msra.mxu1 %v148_v29 }
  0x33   :  { %120 = vmatmul.f32.vlgmr.msra.gmra.mxu0 %v83_v16 }
  0x34   :  { %178 = vmatpush.msra.mxu1 %v147_v30 }
  0x36   :  { %179 = vmatpush.msra.mxu1 %v146_v31 }
  0x38   :  { %180 = vmatpush.msra.mxu1 %v145_v33 }
  0xb0   :  { %v121_v34 = vpop.f32.mrf.mxu0 }
  0xb1   :  { %v122_v35 = vadd.f32 %v213_v32, %v121_v34 }
  0xb3   :  { %v205_v36 = vmul.f32 -1.442695, %v122_v35 }
  0xb5   :  { %215 = vpow2.f32 %v205_v36 }
  0xbb   :  { %v216_v37 = vpop.eup %215 }
  0xbc   :  { %v127_v38 = vadd.f32 1.0, %v216_v37 }
  0xbe   :  { %217 = vrcp.f32 %v127_v38  ;;  %v139_v42 = vand.u32 2147483648, %v127_v38  ;;  %v137_v44 = vand.u32 2147483647, %v127_v38  ;;  %vm133_vm1 = vweird.f32 %v127_v38 }
  0xc0   :  { %v140_v46 = vor.u32 1.1754944e-38, %v139_v42  ;;  %vm138_vm3 = vcmp.eq.f32.partialorder %v137_v44, 8.507059e+37 }
  0xc4   :  { %v218_v39 = vpop.eup %217 }
  0xc5   :  { %v129_v40 = vmul.f32 %v218_v39, %v127_v38  ;;  %vm134_vm0 = vweird.f32 %v218_v39 }
  0xc6   :  { %vm135_vm2 = vmor %vm133_vm1, %vm134_vm0 }
  0xc7   :  { %v130_v41 = vsub.f32 1.0, %v129_v40 }
  0xc9   :  { %v131_v43 = vmul.f32 %v218_v39, %v130_v41 }
  0xcb   :  { %v132_v45 = vadd.f32 %v218_v39, %v131_v43 }
  0xcd   :  { %v136_v48 = vsel %vm135_vm2, %v218_v39, %v132_v45 }
  0xce   :  { %v141_v49 = vsel %vm138_vm3, %v140_v46, %v136_v48 }
  0xcf   :  { %v144_v50 = vmul.f32 %v143_v47, %v141_v49 }
  0xd1   :  { %181 = vmatmul.f32.vlgmr.msra.gmra.mxu1 %v144_v50 }
 0x14e   :  { %v182_v52 = vpop.f32.mrf.mxu1 }
 0x14f   :  { %v183_v53 = vadd.f32 %v214_v51, %v182_v52 }
 0x151   :  { %185 = vst [vmem:[#allocation10] sm:$0xff] %v183_v53 }
 0x152   :  { %196 = dma.vmem_to_hbm [thread:$0]  %s192_s19, 128, %s194_s22, [#allocation4]  }
 0x153   :  { %345 = dma.done.wait [#allocation4], 128  }
 0x154   :  { %346 = vsyncadd [#allocation4], 4294967168 }
 0x155   :  { %201 = vsyncpa [#allocation3], 1 }
 0x156   :  { %202 = vsyncpa [#allocation6], 1 }
 0x157   :  { %203 = vsyncpa [#allocation9], 1 }
 0x158   :  { %204 = vsyncpa [#allocation4], 1 }

</bundles_post_ra>
